<compile_context>
chip_gen: v6e
topology: v6e:2x2x1
jax: 0.10.0
libtpu: 0.0.40
codegen_flags: <defaults>
</compile_context>

<pallas_src>
import functools

import jax
import jax.numpy as jnp
from jax.experimental import pallas as pl
from jax.experimental.pallas import tpu as pltpu

_LANES = 128
_SUBLANES = 8
_MAX_TILE_ROWS = 4096  # 4096*128*4B = 2 MiB per f32 input block (x2 inputs x2 bufs = 8 MiB)


def _ceil_to(x, m):
    return -(-x // m) * m


# ----------------------------- Pallas kernel ------------------------------- #
def _fused_loss_sums_kernel(rb, ro, valid_rows, need_mask,
                            pp_ref, py_ref, rp_ref, rl_ref, out_ref, acc_ref):
    """Fused BCE-sum (grid-reduced over row tiles) + packed L1 sums.

    rb / ro       : static ints, rows of the packed regression block used by
                    bbox / opts.
    valid_rows    : static int, number of valid rows of the points slab
                    (rows beyond this are Pallas block padding -> masked).
    need_mask     : static bool, whether any grid step can see invalid rows.
    """
    c = pl.program_id(0)            # core-split axis ("parallel", 2 TCs on v7x)
    i = pl.program_id(1)            # row-tile reduction axis ("arbitrary")
    inner_n = pl.num_programs(1)
    tile_rows = pp_ref.shape[0]
    full_tiles = valid_rows // tile_rows          # static Python int

    @pl.when(i == 0)
    def _():
        acc_ref[...] = jnp.zeros_like(acc_ref)

    def bce_tile(masked):
        # PyTorch BCELoss semantics (log clamped at -100), f32 math in-kernel.
        #   y*log(p) + (1-y)*log(1-p) == log(1-p) + y*(log(p) - log(1-p))
        # NOTE: the clamp MUST happen before the multiply so zero-padded
        # elements (p=0, y=0) contribute exactly 0 (0 * -100), never 0*-inf.
        p = pp_ref[...].astype(jnp.float32)
        y = py_ref[...].astype(jnp.float32)
        log_p = jnp.maximum(jnp.log(p), -100.0)
        log_1mp = jnp.maximum(jnp.log(1.0 - p), -100.0)
        term = log_1mp + y * (log_p - log_1mp)    # positive sum; negated at finalize
        if masked:
            grow = ((c * inner_n + i) * tile_rows
                    + jax.lax.broadcasted_iota(jnp.int32, term.shape, 0))
            term = jnp.where(grow < valid_rows, term, 0.0)
        # (T,128) -> (T//8, 8, 128) is a layout-preserving vreg regrouping; the
        # axis-0 sum is pure VPU vreg adds into a single (8,128) vreg.
        return jnp.sum(term.reshape(tile_rows // _SUBLANES, _SUBLANES, _LANES),
                       axis=0)

    if need_mask:
        # Only the tail / clamped-duplicate tiles pay for the row mask.
        tile_idx = c * inner_n + i

        @pl.when(tile_idx < full_tiles)
        def _():
            acc_ref[...] += bce_tile(False)

        @pl.when(tile_idx >= full_tiles)
        def _():
            acc_ref[...] += bce_tile(True)
    else:
        acc_ref[...] += bce_tile(False)

    @pl.when(i == inner_n - 1)
    def _():
        bce_s = -jnp.sum(acc_ref[...])            # fold the BCE negation here
        d = jnp.abs(rp_ref[...].astype(jnp.float32)
                    - rl_ref[...].astype(jnp.float32))
        rrow = jax.lax.broadcasted_iota(jnp.int32, d.shape, 0)
        l1b_s = jnp.sum(jnp.where(rrow < rb, d, 0.0))
        l1o_s = jnp.sum(jnp.where((rrow >= rb) & (rrow < rb + ro), d, 0.0))
        # Pack the three partial sums into lanes 0..2 of one (8,128) block.
        lane = jax.lax.broadcasted_iota(jnp.int32, out_ref.shape, 1)
        out_ref[...] = (jnp.where(lane == 0, bce_s, 0.0)
                        + jnp.where(lane == 1, l1b_s, 0.0)
                        + jnp.where(lane == 2, l1o_s, 0.0))


# --------------------------- layout / dispatch ------------------------------ #
def _plan(size, min_itemsize):
    """Static layout plan for the lane-dense (rows, 128) points slab."""
    sub = max(_SUBLANES, 32 // max(int(min_itemsize), 1))  # 8 f32 / 16 bf16 / 32 i8
    lane_rows = -(-max(size, 1) // _LANES)                 # 128-lane rows needed
    row_pad = max(sub - lane_rows, 0)                      # tiny inputs only
    rows = lane_rows + row_pad
    tile_rows = min(_MAX_TILE_ROWS, (rows // sub) * sub)   # multiple of sub, <= rows
    total_tiles = -(-rows // tile_rows)
    par = 2 if total_tiles >= 2 else 1                     # v7x: one half per TC
    inner = -(-total_tiles // par)
    need_mask = (par * inner * tile_rows != rows)
    return lane_rows, row_pad, rows, tile_rows, par, inner, total_tiles, need_mask


def _to_lane_rows(x, lane_rows, row_pad):
    """(rows, 128) lane-dense view in the NATIVE dtype; free reshape when
    numel % 128 == 0 (no HBM copy)."""
    flat = jnp.asarray(x).reshape(-1)
    lane_pad = lane_rows * _LANES - flat.shape[0]
    if lane_pad:
        # TODO(synk): rare ragged path (numel % 128 != 0) still costs one HBM copy.
        flat = jnp.pad(flat, (0, lane_pad))
    x2 = flat.reshape(lane_rows, _LANES)
    if row_pad:
        x2 = jnp.pad(x2, ((0, row_pad), (0, 0)))           # tiny arrays only
    return x2


def _to_reg_rows(x, r):
    flat = jnp.asarray(x, jnp.float32).reshape(-1)
    pad = r * _LANES - flat.shape[0]
    if pad:
        flat = jnp.pad(flat, (0, pad))
    return flat.reshape(r, _LANES)


def _fused_loss_sums(p2, y2, reg_p, reg_l, rb, ro,
                     rows, tile_rows, par, inner, total_tiles, need_mask):
    reg_rows = reg_p.shape[0]

    if par * inner == total_tiles:
        pts_map = lambda c, i: (c * inner + i, 0)
    else:
        last = total_tiles - 1
        # Clamp duplicate steps to the last tile; they are fully row-masked.
        pts_map = lambda c, i: (jnp.minimum(c * inner + i, last), 0)

    kernel = functools.partial(_fused_loss_sums_kernel, rb, ro, rows, need_mask)
    out = pl.pallas_call(
        kernel,
        out_shape=jax.ShapeDtypeStruct((par * _SUBLANES, _LANES), jnp.float32),
        grid_spec=pltpu.PrefetchScalarGridSpec(
            num_scalar_prefetch=0,
            grid=(par, inner),
            in_specs=[
                pl.BlockSpec((tile_rows, _LANES), pts_map),
                pl.BlockSpec((tile_rows, _LANES), pts_map),
                pl.BlockSpec((reg_rows, _LANES), lambda c, i: (0, 0)),
                pl.BlockSpec((reg_rows, _LANES), lambda c, i: (0, 0)),
            ],
            out_specs=pl.BlockSpec((_SUBLANES, _LANES), lambda c, i: (c, 0)),
            scratch_shapes=[pltpu.VMEM((_SUBLANES, _LANES), jnp.float32)],
        ),
        compiler_params=pltpu.CompilerParams(
            dimension_semantics=("parallel", "arbitrary"),
            vmem_limit_bytes=32 * 1024 * 1024,    # v7x-safe, ample for 2 MiB blocks
        ),
    )(p2, y2, reg_p, reg_l)

    out3 = out.reshape(par, _SUBLANES, _LANES)
    bce_sum = jnp.sum(out3[:, 0, 0])              # add per-core partials
    l1b_sum = out3[0, 0, 1]
    l1o_sum = out3[0, 0, 2]
    return bce_sum, l1b_sum, l1o_sum


# ------------------------------- loss fns ----------------------------------- #
@jax.jit
def _bce_mean_impl(pred, label):
    size = pred.size
    min_isz = min(jnp.dtype(pred.dtype).itemsize, jnp.dtype(label.dtype).itemsize)
    lane_rows, row_pad, rows, tile_rows, par, inner, total_tiles, need_mask = \
        _plan(size, min_isz)
    p2 = _to_lane_rows(pred, lane_rows, row_pad)
    y2 = _to_lane_rows(label, lane_rows, row_pad)
    zeros = jnp.zeros((_SUBLANES, _LANES), jnp.float32)
    bce_sum, _, _ = _fused_loss_sums(p2, y2, zeros, zeros, 0, 0,
                                     rows, tile_rows, par, inner,
                                     total_tiles, need_mask)
    return bce_sum / jnp.float32(size)


def bce_loss(pred, label):
    """nn.BCELoss() (mean reduction) via the fused Pallas kernel."""
    return _bce_mean_impl(jnp.asarray(pred), jnp.asarray(label))


def l1_loss(pred, label):
    """nn.L1Loss() (mean). These tensors are a few dozen elements; plain XLA
    beats a kernel dispatch. The CustomLoss2 path folds the L1 terms into the
    fused Pallas kernel instead."""
    p = jnp.asarray(pred, jnp.float32)
    l = jnp.asarray(label, jnp.float32)
    return jnp.mean(jnp.abs(p - l))


@jax.jit
def _custom_loss2_impl(points_pred, points_label, bbox_pred, bbox_label,
                       opts_pred, opts_label, w_bbox, w_opt):
    n_points = points_pred.size
    min_isz = min(jnp.dtype(points_pred.dtype).itemsize,
                  jnp.dtype(points_label.dtype).itemsize)
    lane_rows, row_pad, rows, tile_rows, par, inner, total_tiles, need_mask = \
        _plan(n_points, min_isz)
    p2 = _to_lane_rows(points_pred, lane_rows, row_pad)
    y2 = _to_lane_rows(points_label, lane_rows, row_pad)

    rb = 0 if bbox_pred is None else max(1, -(-bbox_pred.size // _LANES))
    ro = 0 if opts_pred is None else max(1, -(-opts_pred.size // _LANES))
    reg_rows = max(_SUBLANES, _ceil_to(max(rb + ro, 1), _SUBLANES))

    def pack(b, o):
        parts = []
        if b is not None:
            parts.append(_to_reg_rows(b, rb))
        if o is not None:
            parts.append(_to_reg_rows(o, ro))
        fill = reg_rows - rb - ro
        if fill:
            parts.append(jnp.zeros((fill, _LANES), jnp.float32))
        return parts[0] if len(parts) == 1 else jnp.concatenate(parts, axis=0)

    reg_p = pack(bbox_pred, opts_pred)
    reg_l = pack(bbox_label, opts_label)

    bce_sum, l1b_sum, l1o_sum = _fused_loss_sums(
        p2, y2, reg_p, reg_l, rb, ro,
        rows, tile_rows, par, inner, total_tiles, need_mask)

    points_loss = bce_sum / jnp.float32(n_points)
    loss = points_loss
    if bbox_pred is not None:
        bbox_loss = l1b_sum / jnp.float32(bbox_pred.size)
        loss = loss + bbox_loss * w_bbox
    else:
        bbox_loss = jnp.float32(-1.0)
    if opts_pred is not None:
        opt_loss = l1o_sum / jnp.float32(opts_pred.size)
        loss = loss + opt_loss * w_opt
    else:
        opt_loss = jnp.float32(-1.0)
    return loss, points_loss, bbox_loss, opt_loss


# ------------------------------ module port --------------------------------- #
class Config:
    """Minimal stand-in for the training config the PyTorch module expects."""

    class _Opt:
        flag = True

    def __init__(self, loss="CustomLoss2", loss_weights=(1.0, 0.5), opt_flag=True):
        self.loss = loss
        self.loss_weights = loss_weights
        self.opt = Config._Opt()
        self.opt.flag = opt_flag
        self.device = None  # .to(device) is a no-op in JAX


def get_opt_loss(config, loss, batch, out):
    # API parity with the PyTorch helper; the fused CustomLoss2 path inlines it.
    opt_loss = l1_loss(out["opts"], batch["opts_gt"])
    loss = loss + opt_loss * config.loss_weights[1]
    return loss, opt_loss


def custom_loss2(config, out, batch, mode_idx=None):
    use_bbox = config.loss_weights[0] > 0.0
    use_opt = bool(config.opt.flag) and config.loss_weights[1] > 0.0

    loss, points_loss, bbox_loss, opt_loss = _custom_loss2_impl(
        jnp.asarray(out["points"]), jnp.asarray(batch["points"]),
        jnp.asarray(out["bbox"]) if use_bbox else None,
        jnp.asarray(batch["bbox"]) if use_bbox else None,
        jnp.asarray(out["opts"]) if use_opt else None,
        jnp.asarray(batch["opts_gt"]) if use_opt else None,
        float(config.loss_weights[0]), float(config.loss_weights[1]))

    # Device scalars (no blocking .item()/float() sync in the loss path).
    print_loss = {
        "loss": loss,
        "bbox_loss": bbox_loss,
        "heatmap_loss": points_loss,
        "opt_loss": opt_loss,
    }
    return loss, print_loss


class BaseCriterion:
    """JAX/Pallas port of `base_criterion`."""

    def __init__(self, config):
        self.config = config
        if config.loss == "bce":
            self.criterion = lambda out, batch: bce_loss(out, batch)
        elif config.loss == "cross":
            # TODO(synk): CrossEntropyLoss path not exercised by this config; a
            # logsumexp-based Pallas kernel would be needed for logit targets.
            raise NotImplementedError
        elif config.loss == "CustomLoss2":
            self.criterion = functools.partial(custom_loss2, config)
        else:
            raise ValueError(config.loss)

    def __call__(self, out, batch, mode_idx=None):
        if self.config.loss == "CustomLoss2":
            return self.criterion(out, batch, mode_idx=None)
        return self.criterion(out, batch)


# --------------------------------- main -------------------------------------- #
if __name__ == "__main__":
    key = jax.random.PRNGKey(0)
    k1, k2, k3, k4, k5, k6 = jax.random.split(key, 6)

    # Small shapes consistent with the forward: points heatmaps NCHW,
    # bbox regression targets, optional extra regression ("opts").
    N, C, H, W = 2, 4, 16, 16
    points_pred = jax.nn.sigmoid(jax.random.normal(k1, (N, C, H, W), jnp.float32))
    points_gt = jax.random.uniform(k2, (N, C, H, W), jnp.float32)
    bbox_pred = jax.random.normal(k3, (N, 4), jnp.float32)
    bbox_gt = jax.random.normal(k4, (N, 4), jnp.float32)
    opts_pred = jax.random.normal(k5, (N, 8), jnp.float32)
    opts_gt = jax.random.normal(k6, (N, 8), jnp.float32)

    out = {"points": points_pred, "bbox": bbox_pred, "opts": opts_pred}
    batch = {"points": points_gt, "bbox": bbox_gt, "opts_gt": opts_gt}

    config = Config(loss="CustomLoss2", loss_weights=(1.0, 0.5), opt_flag=True)
    criterion = BaseCriterion(config)

    loss, print_loss = criterion(out, batch, mode_idx=None)
    loss = jax.block_until_ready(loss)

    # Reference check against plain JAX (same math, no Pallas).
    def _eps_log(x):
        return jnp.maximum(jnp.log(x), -100.0)

    def _bce_ref(p, y):
        return -jnp.mean(y * _eps_log(p) + (1.0 - y) * _eps_log(1.0 - p))

    ref_p = _bce_ref(points_pred, points_gt)
    ref_b = jnp.mean(jnp.abs(bbox_pred - bbox_gt))
    ref_o = jnp.mean(jnp.abs(opts_pred - opts_gt))
    ref_total = ref_p + ref_b * config.loss_weights[0] + ref_o * config.loss_weights[1]

    assert jnp.allclose(loss, ref_total, rtol=1e-5, atol=1e-5), (loss, ref_total)
    assert jnp.allclose(print_loss["heatmap_loss"], ref_p, rtol=1e-5, atol=1e-5)
    assert jnp.allclose(print_loss["bbox_loss"], ref_b, rtol=1e-5, atol=1e-5)
    assert jnp.allclose(print_loss["opt_loss"], ref_o, rtol=1e-5, atol=1e-5)

    # Medium-size BCE check: exercises multi-tile grid reduction, the dual-core
    # ("parallel") split, tail-row masking and clamped duplicate tiles.
    kb1, kb2 = jax.random.split(jax.random.PRNGKey(1))
    big_pred = jax.nn.sigmoid(jax.random.normal(kb1, (2, 4, 368, 360), jnp.float32))
    big_gt = jax.random.uniform(kb2, (2, 4, 368, 360), jnp.float32)
    got = jax.block_until_ready(bce_loss(big_pred, big_gt))
    want = _bce_ref(big_pred, big_gt)
    assert jnp.allclose(got, want, rtol=1e-4, atol=1e-5), (got, want)

    # Ragged BCE check (numel % 128 != 0): exercises the flat lane-pad path.
    kr1, kr2 = jax.random.split(jax.random.PRNGKey(2))
    rg_pred = jax.nn.sigmoid(jax.random.normal(kr1, (2, 3, 15, 17), jnp.float32))
    rg_gt = jax.random.uniform(kr2, (2, 3, 15, 17), jnp.float32)
    got = jax.block_until_ready(bce_loss(rg_pred, rg_gt))
    want = _bce_ref(rg_pred, rg_gt)
    assert jnp.allclose(got, want, rtol=1e-5, atol=1e-5), (got, want)

    print("KERNEL_OK")
</pallas_src>

<mosaic_0001>
module attributes {stable_mosaic.version = 11 : i64} {
  func.func @_fused_loss_sums_kernel(%arg0: i32, %arg1: i32, %arg2: memref<16x128xf32, #tpu.memory_space<vmem>>, %arg3: memref<16x128xf32, #tpu.memory_space<vmem>>, %arg4: memref<8x128xf32, #tpu.memory_space<vmem>>, %arg5: memref<8x128xf32, #tpu.memory_space<vmem>>, %arg6: memref<8x128xf32, #tpu.memory_space<vmem>>, %arg7: memref<8x128xf32, #tpu.memory_space<vmem>>) attributes {dimension_semantics = [#tpu.dimension_semantics<parallel>, #tpu.dimension_semantics<arbitrary>], iteration_bounds = array<i64: 1, 1>, scalar_prefetch = 0 : i64, scratch_operands = 1 : i64, tpu.core_type = #tpu.core_type<tc>, window_params = [{transform_indices = @transform_0, window_bounds = array<i64: 16, 128>}, {transform_indices = @transform_1, window_bounds = array<i64: 16, 128>}, {pipeline_mode = #tpu.pipeline_mode<synchronous>, transform_indices = @transform_2, window_bounds = array<i64: 8, 128>}, {pipeline_mode = #tpu.pipeline_mode<synchronous>, transform_indices = @transform_3, window_bounds = array<i64: 8, 128>}, {transform_indices = @transform_4, window_bounds = array<i64: 8, 128>}]} {
    %c0_i32 = arith.constant 0 : i32
    %0 = arith.cmpi eq, %arg1, %c0_i32 : i32
    %1 = arith.extui %0 : i1 to i32
    %c0_i32_0 = arith.constant 0 : i32
    %2 = arith.cmpi ne, %1, %c0_i32_0 : i32
    scf.if %2 {
      %cst_13 = arith.constant 0.000000e+00 : f32
      %24 = vector.broadcast %cst_13 : f32 to vector<8x128xf32>
      %c0_14 = arith.constant 0 : index
      %c0_15 = arith.constant 0 : index
      %25 = vector.load %arg7[%c0_14, %c0_15] : memref<8x128xf32, #tpu.memory_space<vmem>>, vector<8x128xf32>
      tpu.vector_store %arg7[%c0_14, %c0_15], %24 {strides = array<i32>} : memref<8x128xf32, #tpu.memory_space<vmem>>, vector<8x128xf32>,
    } else {
    }
    %c0 = arith.constant 0 : index
    %c0_1 = arith.constant 0 : index
    %3 = vector.load %arg7[%c0, %c0_1] : memref<8x128xf32, #tpu.memory_space<vmem>>, vector<8x128xf32>
    %c0_2 = arith.constant 0 : index
    %c0_3 = arith.constant 0 : index
    %4 = vector.load %arg2[%c0_2, %c0_3] : memref<16x128xf32, #tpu.memory_space<vmem>>, vector<16x128xf32>
    %c0_4 = arith.constant 0 : index
    %c0_5 = arith.constant 0 : index
    %5 = vector.load %arg3[%c0_4, %c0_5] : memref<16x128xf32, #tpu.memory_space<vmem>>, vector<16x128xf32>
    %6 = math.log %4 : vector<16x128xf32>
    %cst = arith.constant -1.000000e+02 : f32
    %7 = vector.broadcast %cst : f32 to vector<16x128xf32>
    %8 = arith.maximumf %6, %7 : vector<16x128xf32>
    %cst_6 = arith.constant 1.000000e+00 : f32
    %9 = vector.broadcast %cst_6 : f32 to vector<16x128xf32>
    %10 = arith.subf %9, %4 : vector<16x128xf32>
    %11 = math.log %10 : vector<16x128xf32>
    %cst_7 = arith.constant -1.000000e+02 : f32
    %12 = vector.broadcast %cst_7 : f32 to vector<16x128xf32>
    %13 = arith.maximumf %11, %12 : vector<16x128xf32>
    %14 = arith.subf %8, %13 : vector<16x128xf32>
    %15 = arith.mulf %5, %14 : vector<16x128xf32>
    %16 = arith.addf %13, %15 : vector<16x128xf32>
    %17 = vector.shape_cast %16 : vector<16x128xf32> to vector<2x8x128xf32>
    %cst_8 = arith.constant dense<0.000000e+00> : vector<8x128xf32>
    %18 = vector.multi_reduction <add>, %17, %cst_8 [0] : vector<2x8x128xf32> to vector<8x128xf32>
    %19 = arith.addf %3, %18 : vector<8x128xf32>
    %c0_9 = arith.constant 0 : index
    %c0_10 = arith.constant 0 : index
    %20 = vector.load %arg7[%c0_9, %c0_10] : memref<8x128xf32, #tpu.memory_space<vmem>>, vector<8x128xf32>
    tpu.vector_store %arg7[%c0_9, %c0_10], %19 {strides = array<i32>} : memref<8x128xf32, #tpu.memory_space<vmem>>, vector<8x128xf32>,
    %c0_i32_11 = arith.constant 0 : i32
    %21 = arith.cmpi eq, %arg1, %c0_i32_11 : i32
    %22 = arith.extui %21 : i1 to i32
    %c0_i32_12 = arith.constant 0 : i32
    %23 = arith.cmpi ne, %22, %c0_i32_12 : i32
    scf.if %23 {
      %c0_13 = arith.constant 0 : index
      %c0_14 = arith.constant 0 : index
      %24 = vector.load %arg7[%c0_13, %c0_14] : memref<8x128xf32, #tpu.memory_space<vmem>>, vector<8x128xf32>
      %25 = vector.shape_cast %24 : vector<8x128xf32> to vector<1x8x128xf32>
      %cst_15 = arith.constant dense<0.000000e+00> : vector<1xf32>
      %26 = vector.multi_reduction <add>, %25, %cst_15 [1, 2] : vector<1x8x128xf32> to vector<1xf32>
      %27 = vector.shape_cast %26 : vector<1xf32> to vector<1x1x1xf32>
      %28 = vector.extract %27[0, 0, 0] : f32 from vector<1x1x1xf32>
      %cst_16 = arith.constant 0.000000e+00 : f32
      %29 = arith.subf %cst_16, %28 : f32
      %c0_17 = arith.constant 0 : index
      %c0_18 = arith.constant 0 : index
      %30 = vector.load %arg4[%c0_17, %c0_18] : memref<8x128xf32, #tpu.memory_space<vmem>>, vector<8x128xf32>
      %c0_19 = arith.constant 0 : index
      %c0_20 = arith.constant 0 : index
      %31 = vector.load %arg5[%c0_19, %c0_20] : memref<8x128xf32, #tpu.memory_space<vmem>>, vector<8x128xf32>
      %32 = arith.subf %30, %31 : vector<8x128xf32>
      %33 = math.absf %32 : vector<8x128xf32>
      %34 = tpu.iota {dimensions = array<i32: 0>} : vector<8x128xi32>
      %c1_i32 = arith.constant 1 : i32
      %35 = vector.broadcast %c1_i32 : i32 to vector<8x128xi32>
      %36 = arith.cmpi slt, %34, %35 : vector<8x128xi32>
      %cst_21 = arith.constant 0.000000e+00 : f32
      %37 = vector.broadcast %cst_21 : f32 to vector<8x128xf32>
      %38 = arith.select %36, %33, %37 : vector<8x128xi1>, vector<8x128xf32>
      %39 = vector.shape_cast %38 : vector<8x128xf32> to vector<1x8x128xf32>
      %cst_22 = arith.constant dense<0.000000e+00> : vector<1xf32>
      %40 = vector.multi_reduction <add>, %39, %cst_22 [1, 2] : vector<1x8x128xf32> to vector<1xf32>
      %41 = vector.shape_cast %40 : vector<1xf32> to vector<1x1x1xf32>
      %42 = vector.extract %41[0, 0, 0] : f32 from vector<1x1x1xf32>
      %c1_i32_23 = arith.constant 1 : i32
      %43 = vector.broadcast %c1_i32_23 : i32 to vector<8x128xi32>
      %44 = arith.cmpi sge, %34, %43 : vector<8x128xi32>
      %c2_i32 = arith.constant 2 : i32
      %45 = vector.broadcast %c2_i32 : i32 to vector<8x128xi32>
      %46 = arith.cmpi slt, %34, %45 : vector<8x128xi32>
      %47 = arith.andi %44, %46 : vector<8x128xi1>
      %cst_24 = arith.constant 0.000000e+00 : f32
      %48 = vector.broadcast %cst_24 : f32 to vector<8x128xf32>
      %49 = arith.select %47, %33, %48 : vector<8x128xi1>, vector<8x128xf32>
      %50 = vector.shape_cast %49 : vector<8x128xf32> to vector<1x8x128xf32>
      %cst_25 = arith.constant dense<0.000000e+00> : vector<1xf32>
      %51 = vector.multi_reduction <add>, %50, %cst_25 [1, 2] : vector<1x8x128xf32> to vector<1xf32>
      %52 = vector.shape_cast %51 : vector<1xf32> to vector<1x1x1xf32>
      %53 = vector.extract %52[0, 0, 0] : f32 from vector<1x1x1xf32>
      %54 = tpu.iota {dimensions = array<i32: 1>} : vector<8x128xi32>
      %c0_i32_26 = arith.constant 0 : i32
      %55 = vector.broadcast %c0_i32_26 : i32 to vector<8x128xi32>
      %56 = arith.cmpi eq, %54, %55 : vector<8x128xi32>
      %cst_27 = arith.constant 0.000000e+00 : f32
      %57 = vector.broadcast %29 : f32 to vector<8x128xf32>
      %58 = vector.broadcast %cst_27 : f32 to vector<8x128xf32>
      %59 = arith.select %56, %57, %58 : vector<8x128xi1>, vector<8x128xf32>
      %c1_i32_28 = arith.constant 1 : i32
      %60 = vector.broadcast %c1_i32_28 : i32 to vector<8x128xi32>
      %61 = arith.cmpi eq, %54, %60 : vector<8x128xi32>
      %cst_29 = arith.constant 0.000000e+00 : f32
      %62 = vector.broadcast %42 : f32 to vector<8x128xf32>
      %63 = vector.broadcast %cst_29 : f32 to vector<8x128xf32>
      %64 = arith.select %61, %62, %63 : vector<8x128xi1>, vector<8x128xf32>
      %65 = arith.addf %59, %64 : vector<8x128xf32>
      %c2_i32_30 = arith.constant 2 : i32
      %66 = vector.broadcast %c2_i32_30 : i32 to vector<8x128xi32>
      %67 = arith.cmpi eq, %54, %66 : vector<8x128xi32>
      %cst_31 = arith.constant 0.000000e+00 : f32
      %68 = vector.broadcast %53 : f32 to vector<8x128xf32>
      %69 = vector.broadcast %cst_31 : f32 to vector<8x128xf32>
      %70 = arith.select %67, %68, %69 : vector<8x128xi1>, vector<8x128xf32>
      %71 = arith.addf %65, %70 : vector<8x128xf32>
      %c0_32 = arith.constant 0 : index
      %c0_33 = arith.constant 0 : index
      %72 = vector.load %arg6[%c0_32, %c0_33] : memref<8x128xf32, #tpu.memory_space<vmem>>, vector<8x128xf32>
      tpu.vector_store %arg6[%c0_32, %c0_33], %71 {strides = array<i32>} : memref<8x128xf32, #tpu.memory_space<vmem>>, vector<8x128xf32>,
    } else {
    }
    return
  }
  func.func @transform_0(%arg0: i32, %arg1: i32) -> (i32, i32) {
    %c1_i32 = arith.constant 1 : i32
    %0 = arith.muli %arg0, %c1_i32 : i32
    %1 = arith.addi %0, %arg1 : i32
    %c0_i32 = arith.constant 0 : i32
    %c0_i32_0 = arith.constant 0 : i32
    return %1, %c0_i32 : i32, i32
  }
  func.func @transform_1(%arg0: i32, %arg1: i32) -> (i32, i32) {
    %c1_i32 = arith.constant 1 : i32
    %0 = arith.muli %arg0, %c1_i32 : i32
    %1 = arith.addi %0, %arg1 : i32
    %c0_i32 = arith.constant 0 : i32
    %c0_i32_0 = arith.constant 0 : i32
    return %1, %c0_i32 : i32, i32
  }
  func.func @transform_2(%arg0: i32, %arg1: i32) -> (i32, i32) {
    %c0_i32 = arith.constant 0 : i32
    %c0_i32_0 = arith.constant 0 : i32
    %c0_i32_1 = arith.constant 0 : i32
    return %c0_i32, %c0_i32_0 : i32, i32
  }
  func.func @transform_3(%arg0: i32, %arg1: i32) -> (i32, i32) {
    %c0_i32 = arith.constant 0 : i32
    %c0_i32_0 = arith.constant 0 : i32
    %c0_i32_1 = arith.constant 0 : i32
    return %c0_i32, %c0_i32_0 : i32, i32
  }
  func.func @transform_4(%arg0: i32, %arg1: i32) -> (i32, i32) {
    %c0_i32 = arith.constant 0 : i32
    %c0_i32_0 = arith.constant 0 : i32
    return %arg0, %c0_i32 : i32, i32
  }
}

</mosaic_0001>

<bundles_post_ra>
// kernel: _custom_loss2_impl.1
= control target key start
LH: loop header
LB: loop body
LE: loop exit
PB: predicated region body
PF: predicated region fallthrough
CT: control target
= control target key end

     0   :  { %v112_v0 = vlaneseq  ;;  %s230_s2 = inlined_call_operand.vmem [shape: f32[8,128], index: 2, kind: input, shape index: {}]   ;;  %s231_s3 = inlined_call_operand.vmem [shape: f32[8,128], index: 3, kind: input, shape index: {}]   ;;  %s232_s0 = inlined_call_operand.vmem [shape: f32[16,128], index: 0, kind: input, shape index: {}]   ;;  %s233_s1 = inlined_call_operand.vmem [shape: f32[16,128], index: 1, kind: input, shape index: {}]   ;;  %s234_s4 = inlined_call_operand.vmem [shape: f32[8,128], index: 4, kind: output, shape index: {}]  }
   0x1   :  { %v108_v1 = vld [vmem:[%s230_s2] sm:$0xff]  ;;  %v68_v6 = vld [vmem:[%s232_s0 + $0x8] sm:$0xff] }
   0x2   :  { %v109_v2 = vld [vmem:[%s231_s3] sm:$0xff]  ;;  %v113_v5 = vshrl.u32 %v112_v0, 7  ;;  %v78_v8 = vsub.f32 1.0, %v68_v6  ;;  %v70_v24 = vld [vmem:[%s233_s1 + $0x8] sm:$0xff]  ;;  %v139_v54 = vand.u32 127, %v112_v0 }
   0x3   :  { %v67_v3 = vld [vmem:[%s232_s0] sm:$0xff]  ;;  %v110_v4 = vsub.f32 %v108_v1, %v109_v2 }
   0x4   :  { %174 = vlog2.f32 %v67_v3  ;;  %v77_v7 = vsub.f32 1.0, %v67_v3  ;;  %vm125_vm0 = vcmp.ge.s32.totalorder %v113_v5, 1  ;;  %vm126_vm1 = vcmp.lt.s32.totalorder %v113_v5, 2  ;;  %v69_v22 = vld [vmem:[%s233_s1] sm:$0xff] }
   0x5   :  { %176 = vlog2.f32 %v68_v6  ;;  %v111_v9 = vand.u32 2147483647, %v110_v4  ;;  %vm127_vm2 = vmand %vm125_vm0, %vm126_vm1  ;;  %vm114_vm3 = vcmp.lt.s32.totalorder %v113_v5, 1  ;;  %vm140_vm4 = vcmp.eq.s32.totalorder %v139_v54, 0 }
   0x6   :  { %178 = vlog2.f32 %v77_v7  ;;  %vm143_vm5 = vcmp.eq.s32.totalorder %v139_v54, 1  ;;  %vm147_vm6 = vcmp.eq.s32.totalorder %v139_v54, 2 }
   0x7   :  { %180 = vlog2.f32 %v78_v8  ;;  %v128_v10 = vsel %vm127_vm2, %v111_v9, 0.0  ;;  %v115_v32 = vsel %vm114_vm3, %v111_v9, 0.0 }
   0x8   :  { %129 = vadd.xlane.f32.xlu1 %v128_v10 }
  0x11   :  { %v175_v11 = vpop.eup %174 }
  0x12   :  { %v177_v12 = vpop.eup %176  ;;  %v72_v13 = vmul.f32 0.6931472, %v175_v11 }
  0x13   :  { %v179_v14 = vpop.eup %178  ;;  %v74_v15 = vmul.f32 0.6931472, %v177_v12 }
  0x14   :  { %v181_v16 = vpop.eup %180  ;;  %v75_v17 = vmax.f32 %v72_v13, -100.0  ;;  %v80_v18 = vmul.f32 0.6931472, %v179_v14 }
  0x15   :  { %v76_v19 = vmax.f32 %v74_v15, -100.0  ;;  %v82_v20 = vmul.f32 0.6931472, %v181_v16 }
  0x16   :  { %v83_v21 = vmax.f32 %v80_v18, -100.0 }
  0x17   :  { %v84_v23 = vmax.f32 %v82_v20, -100.0 }
  0x18   :  { %v85_v25 = vsub.f32 %v75_v17, %v83_v21 }
  0x19   :  { %v86_v26 = vsub.f32 %v76_v19, %v84_v23 }
  0x1a   :  { %v87_v27 = vmul.f32 %v85_v25, %v69_v22 }
  0x1b   :  { %v88_v28 = vmul.f32 %v86_v26, %v70_v24 }
  0x1c   :  { %v89_v29 = vadd.f32 %v87_v27, %v83_v21 }
  0x1d   :  { %v90_v30 = vadd.f32 %v88_v28, %v84_v23 }
  0x1f   :  { %v91_v31 = vadd.f32 %v90_v30, %v89_v29 }
  0x21   :  { %98 = vadd.xlane.f32.xlu0 %v91_v31 }
  0x25   :  { %116 = vadd.xlane.f32.xlu0 %v115_v32 }
  0x91   :  { %v130_v33 = vpop.xlane.xlu1 %129 }
  0x92   :  { %v131_v34 = vrot.slane %v130_v33, 4 }
  0x94   :  { %v132_v35 = vadd.f32 %v131_v34, %v130_v33 }
  0x96   :  { %v133_v39 = vrot.slane %v132_v35, 2 }
  0x98   :  { %v134_v45 = vadd.f32 %v133_v39, %v132_v35 }
  0x9a   :  { %v135_v50 = vrot.slane %v134_v45, 1 }
  0x9c   :  { %v136_v53 = vadd.f32 %v135_v50, %v134_v45 }
  0xaa   :  { %v99_v36 = vpop.xlane.xlu0 %98 }
  0xab   :  { %v100_v37 = vrot.slane %v99_v36, 4 }
  0xad   :  { %v101_v38 = vadd.f32 %v100_v37, %v99_v36 }
  0xae   :  { %v117_v40 = vpop.xlane.xlu0 %116 }
  0xaf   :  { %v102_v41 = vrot.slane %v101_v38, 2  ;;  %v118_v42 = vrot.slane %v117_v40, 4 }
  0xb1   :  { %v119_v43 = vadd.f32 %v118_v42, %v117_v40  ;;  %v103_v44 = vadd.f32 %v102_v41, %v101_v38 }
  0xb3   :  { %v120_v46 = vrot.slane %v119_v43, 2  ;;  %v104_v47 = vrot.slane %v103_v44, 1 }
  0xb5   :  { %v121_v48 = vadd.f32 %v120_v46, %v119_v43  ;;  %v105_v49 = vadd.f32 %v104_v47, %v103_v44 }
  0xb7   :  { %168 = vpush %v105_v49  ;;  %v122_v51 = vrot.slane %v121_v48, 1 }
  0xb9   :  { %v123_v52 = vadd.f32 %v122_v51, %v121_v48 }
  0xbb   :  { %170 = vpush %v123_v52 }
  0xbc   :  { %172 = vpush %v136_v53 }
  0xe8   :  { %s169_s1 = spop %168 }
  0xe9   :  { %s107_s24 = ssub.f32 0.0, %s169_s1 }
  0xeb   :  { %v141_v55 = vstv %s107_s24 }
  0xec   :  { %s171_s25 = spop %170  ;;  %v142_v57 = vsel %vm140_vm4, %v141_v55, 0.0 }
  0xed   :  { %v144_v56 = vstv %s171_s25  ;;  %s173_s26 = spop %172 }
  0xee   :  { %v145_v58 = vsel %vm143_vm5, %v144_v56, 0.0  ;;  %v148_v59 = vstv %s173_s26 }
  0xef   :  { %v146_v60 = vadd.f32 %v145_v58, %v142_v57  ;;  %v149_v61 = vsel %vm147_vm6, %v148_v59, 0.0 }
  0xf1   :  { %v150_v62 = vadd.f32 %v149_v61, %v146_v60 }
  0xf3   :  { %151 = vst [vmem:[%s234_s4] sm:$0xff] %v150_v62 }

</bundles_post_ra>
